<compile_context>
chip_gen: v7x
topology: tpu7x:2x2x1
jax: 0.10.0
libtpu: 0.0.40
codegen_flags: <defaults>
</compile_context>

<pallas_src>
import functools

import jax
import jax.numpy as jnp
from jax.experimental import pallas as pl
from jax.experimental.pallas import tpu as pltpu


_SUBLANE = 8                   # f32 sublane pack; in-kernel reshape needs Tp % 8 == 0
_V5E_SCOPED_VMEM = 14 << 20    # stay under v5e's 16 MiB scoped-VMEM default (w/ margin)
_VMEM_BUDGET = 24 << 20        # conservative: leaves headroom on v7x's 64 MiB physical


def _soft_attention_kernel(x_ref, w_ref, b_ref, v_ref, o_ref, *, t_valid):
    # x_ref: (tb, Tp, E) batch-tile slab (f32 or bf16)
    # w_ref: (E, A)      linear weight (pre-transposed: x @ W form), f32
    # b_ref: (1, A)      linear bias, f32
    # v_ref: (A, 1)      attention vector (column form for the MXU matvec), f32
    # o_ref: (tb, E)     output rows for this batch tile
    tb, tp, e_dim = x_ref.shape

    x = x_ref[...].astype(jnp.float32)            # single upcast (bf16 path); no-op for f32
    x2 = x.reshape(tb * tp, e_dim)                # layout-preserving: Tp is a multiple of 8

    # h = tanh(x @ W^T + b): one large MXU GEMM over all tb*Tp rows.
    h = jnp.tanh(
        jnp.dot(x2, w_ref[...], preferred_element_type=jnp.float32) + b_ref[...]
    )                                             # (tb*Tp, A)

    # Attention logits e = h @ v (MXU matvec), back to per-batch layout.
    e = jnp.dot(h, v_ref[...], preferred_element_type=jnp.float32)
    e = e.reshape(tb, tp, 1)                      # leading-dim split (layout-preserving)

    # Mask sequence padding (branch only emitted when the wrapper padded T -> Tp).
    if t_valid != tp:
        t_idx = jax.lax.broadcasted_iota(jnp.int32, (tb, tp, 1), 1)
        e = jnp.where(t_idx < t_valid, e, -jnp.inf)

    # Softmax over the (padded) sequence axis, independently per batch row.
    e_max = jnp.max(e, axis=1, keepdims=True)     # (tb, 1, 1)
    p = jnp.exp(e - e_max)                        # (tb, Tp, 1); padded positions -> 0
    denom = jnp.sum(p, axis=1, keepdims=True)     # (tb, 1, 1)
    p = p * pl.reciprocal(denom, approx=True)     # EUP vrcp, ~free slot

    # Weighted sum over the sequence axis -> (tb, E).  Kept on the VPU: p
    # already shares x's (sublane=Tp, lane=E) layout; an M=1 batched MXU
    # matmul would only add relayouts in this memory-bound kernel.
    out = jnp.sum(p * x, axis=1)
    o_ref[...] = out.astype(o_ref.dtype)


def soft_attention(values, w_t, bias, v, *, target_tile_bytes=2 << 20,
                   cast_values_to_bf16=False):
    """values: (B, T, E); w_t: (E, A); bias: (A,); v: (A,)  ->  (B, E)."""
    out_dtype = values.dtype
    B, T, E = values.shape
    A = w_t.shape[1]

    # Optional bf16 path for the dominant HBM traffic (accumulation stays f32).
    if cast_values_to_bf16:
        values = values.astype(jnp.bfloat16)
    itemsize = values.dtype.itemsize

    # Pad T to a multiple of the f32 sublane pack so the in-kernel
    # (tb, Tp, E) -> (tb*Tp, E) reshape is layout-preserving.  Padded
    # positions are masked to -inf before the softmax.
    Tp = pl.cdiv(T, _SUBLANE) * _SUBLANE
    if Tp != T:
        values = jnp.pad(values, ((0, 0), (0, Tp - T), (0, 0)))

    # ---------------- Batch tile derivation ----------------
    row_bytes = Tp * E * itemsize                 # bytes of `values` per batch row

    def vmem_estimate(tb_):
        pipelined = 2 * tb_ * row_bytes + 2 * tb_ * E * 4        # double-buffered in/out
        interm = tb_ * Tp * (E + A + 1) * 4                      # f32 x-upcast + h + p
        params = 2 * (E * A + 2 * A) * 4                         # tiny shared params
        return pipelined + interm + params

    # Target ~target_tile_bytes of `values` per grid step (amortizes the
    # ~0.35 us/step overhead; MiB-scale tiles reach >=85% of HBM roofline).
    tb = max(_SUBLANE, (target_tile_bytes // row_bytes) // _SUBLANE * _SUBLANE)
    # Never (much) larger than the batch itself.
    tb = min(tb, pl.cdiv(B, _SUBLANE) * _SUBLANE)
    # Keep at least 2 grid steps when the batch allows it, so
    # dimension_semantics=("parallel",) can shard across both TCs on v7x.
    two_step_cap = (B // (2 * _SUBLANE)) * _SUBLANE
    if two_step_cap >= _SUBLANE:
        tb = min(tb, two_step_cap)
    # Cap against VMEM (fits v7x's 64 MiB and v5e/v6e scoped defaults).
    while tb > _SUBLANE and vmem_estimate(tb) > _VMEM_BUDGET:
        tb -= _SUBLANE

    # Pad the batch so the grid tiles evenly; padded rows are all-zero
    # (softmax denominator stays finite) and are sliced off below.
    Bp = pl.cdiv(B, tb) * tb
    if Bp != B:
        values = jnp.pad(values, ((0, Bp - B), (0, 0), (0, 0)))

    # Only raise the scoped-VMEM limit when the estimate exceeds the smallest
    # (v5e) default; our budget already fits every generation's physical VMEM.
    vmem_limit = None
    if vmem_estimate(tb) > _V5E_SCOPED_VMEM:
        vmem_limit = _VMEM_BUDGET + (8 << 20)

    kernel = functools.partial(_soft_attention_kernel, t_valid=T)

    out = pl.pallas_call(
        kernel,
        out_shape=jax.ShapeDtypeStruct((Bp, E), out_dtype),
        grid_spec=pltpu.PrefetchScalarGridSpec(
            num_scalar_prefetch=0,
            grid=(Bp // tb,),
            in_specs=[
                pl.BlockSpec((tb, Tp, E), lambda i: (i, 0, 0)),  # batch-tile slab
                pl.BlockSpec((E, A), lambda i: (0, 0)),          # shared weight (invariant)
                pl.BlockSpec((1, A), lambda i: (0, 0)),          # shared bias (invariant)
                pl.BlockSpec((A, 1), lambda i: (0, 0)),          # shared v (invariant)
            ],
            out_specs=pl.BlockSpec((tb, E), lambda i: (i, 0)),
        ),
        compiler_params=pltpu.CompilerParams(
            dimension_semantics=("parallel",),   # shards batch tiles across TCs on v7x
            vmem_limit_bytes=vmem_limit,
        ),
    )(values, w_t, bias.reshape(1, A), v.reshape(A, 1))

    return out[:B]


def soft_attention_ref(values, w_t, bias, v):
    h = jnp.tanh(jnp.einsum("bte,ea->bta", values, w_t) + bias)
    e = jnp.einsum("bta,a->bt", h, v)
    a = jax.nn.softmax(e, axis=-1)
    return jnp.einsum("bt,bte->be", a, values)


if __name__ == "__main__":
    root = jax.random.PRNGKey(0)

    def make_params(key, emb_dim, attn_dim):
        k_w, k_b, k_v = jax.random.split(key, 3)
        stdv_w = 1.0 / jnp.sqrt(jnp.float32(emb_dim))
        stdv_v = 1.0 / jnp.sqrt(jnp.float32(attn_dim))
        w_t = jax.random.uniform(k_w, (emb_dim, attn_dim), jnp.float32, -stdv_w, stdv_w)
        bias = jax.random.uniform(k_b, (attn_dim,), jnp.float32, -stdv_w, stdv_w)
        v = jax.random.uniform(k_v, (attn_dim,), jnp.float32, -stdv_v, stdv_v)
        return w_t, bias, v

    # Case 1: module-like small shapes (B=2, T=8, E=32, A=16).
    k_p, k_x, root = jax.random.split(root, 3)
    B, T, E, A = 2, 8, 32, 16
    w_t, bias, v = make_params(k_p, E, A)
    values = jax.random.normal(k_x, (B, T, E), jnp.float32)
    out = jax.block_until_ready(soft_attention(values, w_t, bias, v))
    ref = soft_attention_ref(values, w_t, bias, v)
    assert out.shape == (B, E)
    assert jnp.allclose(out, ref, atol=2e-3, rtol=2e-3), "case1 mismatch vs reference"

    # Case 2: larger batch exercising the multi-step grid, batch padding and
    # the sequence-padding mask (T=10 -> Tp=16).
    k_p, k_x, root = jax.random.split(root, 3)
    B, T, E, A = 100, 10, 32, 24
    w_t, bias, v = make_params(k_p, E, A)
    values = jax.random.normal(k_x, (B, T, E), jnp.float32)
    out = jax.block_until_ready(soft_attention(values, w_t, bias, v))
    ref = soft_attention_ref(values, w_t, bias, v)
    assert out.shape == (B, E)
    assert jnp.allclose(out, ref, atol=2e-3, rtol=2e-3), "case2 mismatch vs reference"

    # Case 3: bf16 input-traffic path (compared against the bf16-rounded input).
    out_bf = jax.block_until_ready(
        soft_attention(values, w_t, bias, v, cast_values_to_bf16=True))
    ref_bf = soft_attention_ref(
        values.astype(jnp.bfloat16).astype(jnp.float32), w_t, bias, v)
    assert out_bf.shape == (B, E)
    assert jnp.allclose(out_bf, ref_bf, atol=5e-3, rtol=5e-3), "case3 mismatch vs reference"

    print("KERNEL_OK")
</pallas_src>

<mosaic_0001>
module attributes {stable_mosaic.version = 11 : i64} {
  func.func @_soft_attention_kernel(%arg0: i32, %arg1: memref<8x8x32xf32, #tpu.memory_space<vmem>>, %arg2: memref<32x16xf32, #tpu.memory_space<vmem>>, %arg3: memref<1x16xf32, #tpu.memory_space<vmem>>, %arg4: memref<16x1xf32, #tpu.memory_space<vmem>>, %arg5: memref<8x32xf32, #tpu.memory_space<vmem>>) attributes {dimension_semantics = [#tpu.dimension_semantics<parallel>], iteration_bounds = array<i64: 1>, scalar_prefetch = 0 : i64, scratch_operands = 0 : i64, tpu.core_type = #tpu.core_type<tc>, window_params = [{transform_indices = @transform_0, window_bounds = array<i64: 8, 8, 32>}, {pipeline_mode = #tpu.pipeline_mode<synchronous>, transform_indices = @transform_1, window_bounds = array<i64: 32, 16>}, {pipeline_mode = #tpu.pipeline_mode<synchronous>, transform_indices = @transform_2, window_bounds = array<i64: 1, 16>}, {pipeline_mode = #tpu.pipeline_mode<synchronous>, transform_indices = @transform_3, window_bounds = array<i64: 16, 1>}, {transform_indices = @transform_4, window_bounds = array<i64: 8, 32>}]} {
    %c0 = arith.constant 0 : index
    %c0_0 = arith.constant 0 : index
    %c0_1 = arith.constant 0 : index
    %0 = vector.load %arg1[%c0, %c0_0, %c0_1] : memref<8x8x32xf32, #tpu.memory_space<vmem>>, vector<8x8x32xf32>
    %1 = vector.shape_cast %0 : vector<8x8x32xf32> to vector<64x32xf32>
    %c0_2 = arith.constant 0 : index
    %c0_3 = arith.constant 0 : index
    %2 = vector.load %arg2[%c0_2, %c0_3] : memref<32x16xf32, #tpu.memory_space<vmem>>, vector<32x16xf32>
    %cst = arith.constant dense<0.000000e+00> : vector<64x16xf32>
    %3 = tpu.matmul %1, %2, %cst {dimension_numbers = #tpu.dot_dimension_numbers<[1], [0], [0], [1], [0, 0, 1, 1], [], []>} : vector<64x32xf32>, vector<32x16xf32>, vector<64x16xf32> -> vector<64x16xf32>
    %c0_4 = arith.constant 0 : index
    %c0_5 = arith.constant 0 : index
    %4 = vector.load %arg3[%c0_4, %c0_5] : memref<1x16xf32, #tpu.memory_space<vmem>>, vector<1x16xf32>
    %5 = vector.broadcast %4 : vector<1x16xf32> to vector<64x16xf32>
    %6 = arith.addf %3, %5 : vector<64x16xf32>
    %7 = math.tanh %6 : vector<64x16xf32>
    %c0_6 = arith.constant 0 : index
    %c0_7 = arith.constant 0 : index
    %8 = vector.load %arg4[%c0_6, %c0_7] : memref<16x1xf32, #tpu.memory_space<vmem>>, vector<16x1xf32>
    %cst_8 = arith.constant dense<0.000000e+00> : vector<64x1xf32>
    %9 = tpu.matmul %7, %8, %cst_8 {dimension_numbers = #tpu.dot_dimension_numbers<[1], [0], [0], [1], [0, 0, 1, 1], [], []>} : vector<64x16xf32>, vector<16x1xf32>, vector<64x1xf32> -> vector<64x1xf32>
    %10 = vector.shape_cast %9 : vector<64x1xf32> to vector<8x8x1xf32>
    %cst_9 = arith.constant dense<0xFF800000> : vector<8x1xf32>
    %11 = vector.multi_reduction <maximumf>, %10, %cst_9 [1] : vector<8x8x1xf32> to vector<8x1xf32>
    %12 = vector.shape_cast %11 : vector<8x1xf32> to vector<8x1x1xf32>
    %13 = vector.broadcast %12 : vector<8x1x1xf32> to vector<8x8x1xf32>
    %14 = arith.subf %10, %13 : vector<8x8x1xf32>
    %15 = math.exp %14 : vector<8x8x1xf32>
    %cst_10 = arith.constant dense<0.000000e+00> : vector<8x1xf32>
    %16 = vector.multi_reduction <add>, %15, %cst_10 [1] : vector<8x8x1xf32> to vector<8x1xf32>
    %17 = vector.shape_cast %16 : vector<8x1xf32> to vector<8x1x1xf32>
    %18 = tpu.reciprocal %17 {approx = true} : vector<8x1x1xf32> -> vector<8x1x1xf32>
    %19 = vector.broadcast %18 : vector<8x1x1xf32> to vector<8x8x1xf32>
    %20 = arith.mulf %15, %19 : vector<8x8x1xf32>
    %21 = vector.broadcast %20 : vector<8x8x1xf32> to vector<8x8x32xf32>
    %22 = arith.mulf %21, %0 : vector<8x8x32xf32>
    %cst_11 = arith.constant dense<0.000000e+00> : vector<8x32xf32>
    %23 = vector.multi_reduction <add>, %22, %cst_11 [1] : vector<8x8x32xf32> to vector<8x32xf32>
    %c0_12 = arith.constant 0 : index
    %c0_13 = arith.constant 0 : index
    %24 = vector.load %arg5[%c0_12, %c0_13] : memref<8x32xf32, #tpu.memory_space<vmem>>, vector<8x32xf32>
    tpu.vector_store %arg5[%c0_12, %c0_13], %23 {strides = array<i32>} : memref<8x32xf32, #tpu.memory_space<vmem>>, vector<8x32xf32>,
    return
  }
  func.func @transform_0(%arg0: i32) -> (i32, i32, i32) {
    %c0_i32 = arith.constant 0 : i32
    %c0_i32_0 = arith.constant 0 : i32
    %c0_i32_1 = arith.constant 0 : i32
    return %arg0, %c0_i32, %c0_i32_0 : i32, i32, i32
  }
  func.func @transform_1(%arg0: i32) -> (i32, i32) {
    %c0_i32 = arith.constant 0 : i32
    %c0_i32_0 = arith.constant 0 : i32
    %c0_i32_1 = arith.constant 0 : i32
    return %c0_i32, %c0_i32_0 : i32, i32
  }
  func.func @transform_2(%arg0: i32) -> (i32, i32) {
    %c0_i32 = arith.constant 0 : i32
    %c0_i32_0 = arith.constant 0 : i32
    %c0_i32_1 = arith.constant 0 : i32
    return %c0_i32, %c0_i32_0 : i32, i32
  }
  func.func @transform_3(%arg0: i32) -> (i32, i32) {
    %c0_i32 = arith.constant 0 : i32
    %c0_i32_0 = arith.constant 0 : i32
    %c0_i32_1 = arith.constant 0 : i32
    return %c0_i32, %c0_i32_0 : i32, i32
  }
  func.func @transform_4(%arg0: i32) -> (i32, i32) {
    %c0_i32 = arith.constant 0 : i32
    %c0_i32_0 = arith.constant 0 : i32
    return %arg0, %c0_i32 : i32, i32
  }
}

</mosaic_0001>

<bundles_post_ra>
// kernel: tpu_custom_call.1
= control target key start
LH: loop header
LB: loop body
LE: loop exit
PB: predicated region body
PF: predicated region fallthrough
CT: control target
= control target key end

     0   :  { %vm37_vm0 = vcmask 261120   ;;  %s950_s0 = inlined_call_operand.vmem [shape: f32[8,8,32], index: 0, kind: input, shape index: {}]   ;;  %s951_s1 = inlined_call_operand.vmem [shape: f32[32,16], index: 1, kind: input, shape index: {}]   ;;  %s952_s2 = inlined_call_operand.vmem [shape: f32[1,16], index: 2, kind: input, shape index: {}]   ;;  %s953_s3 = inlined_call_operand.vmem [shape: f32[16,1], index: 3, kind: input, shape index: {}]   ;;  %s954_s4 = inlined_call_operand.hbm [shape: f32[8,32], index: 4, kind: output, shape index: {}]  }
   0x1   :  { %v26_v0 = vld [vmem:[%s951_s1] sm:$0xff]  ;;  %v27_v1 = vld [vmem:[%s951_s1 + $0x8] sm:$0xff]  ;;  %v28_v2 = vld [vmem:[%s951_s1 + $0x10] sm:$0xff] }
   0x2   :  { %v677_v3 = vpack.c.bf16 %v27_v1, %v26_v0  ;;  %v29_v4 = vld [vmem:[%s951_s1 + $0x18] sm:$0xff]  ;;  %v807_v5 = vld [vmem:[%s950_s0] sm:$0xff] }
   0x3   :  { %v681_v6 = vpack.c.bf16 %v29_v4, %v28_v2  ;;  %649 = vmatprep.mubr.msk.f32.mxu0 %vm37_vm0, %v807_v5 }
   0x4   :  { %678 = vmatprep.subr.bf16.mxu0 %v677_v3 }
   0x5   :  { %680 = vmatpush3.bf16.msra.mxu0 %v677_v3 }
   0x6   :  { %9 = vsyncpa [#allocation3], 0  ;;  %682 = vmatprep.subr.bf16.mxu0 %v681_v6  ;;  %v814_v7 = vld [vmem:[%s950_s0 + $0x8] sm:$0xff]  ;;  %v819_v8 = vld [vmem:[%s950_s0 + $0x10] sm:$0xff]  ;;  %vm177_vm1 = vcmask 130048   ;;  %v765_v42 = vmov 0  }
   0x7   :  { %v828_v9 = vld [vmem:[%s950_s0 + $0x18] sm:$0xff]  ;;  %v833_v10 = vld [vmem:[%s950_s0 + $0x20] sm:$0xff]  ;;  %v842_v11 = vld [vmem:[%s950_s0 + $0x28] sm:$0xff]  ;;  %691 = vset.pattern.permute.xlu0 %v765_v42  ;;  %692 = vset.pattern.permute.xlu1 %v765_v42  ;;  %vm307_vm2 = vcmask 7168   ;;  %vm572_vm3 = vcmask 1041409   ;;  %vm574_vm4 = vcmask 1042434  }
   0x8   :  { %v847_v12 = vld [vmem:[%s950_s0 + $0x30] sm:$0xff]  ;;  %v856_v13 = vld [vmem:[%s950_s0 + $0x38] sm:$0xff]  ;;  %v175_v14 = vld [vmem:[%s953_s3] sm:$0xff]  ;;  %vm576_vm5 = vcmask 1043459   ;;  %vm578_vm6 = vcmask 1044484   ;;  %vm580_vm7 = vcmask 1045509  }
   0x9   :  { %684 = vmatpush3.bf16.msra.mxu0 %v681_v6  ;;  %v176_v15 = vld [vmem:[%s953_s3 + $0x8] sm:$0xff]  ;;  %v602_v17 = vld [vmem:[%s952_s2] ss:$0 sm:$0xff]  ;;  %vm582_vm8 = vcmask 1046534   ;;  %s766_s0 = smov [#allocation2]   ;;  %vm584_vm9 = vcmask 1047559  }
   0xa   :  { %v685_v16 = vpack.c.bf16 %v176_v15, %v175_v14  ;;  %s594_s2 = sshll.u32 %s766_s0, 4  ;;  %s595_s2 = int_to_ptr.vmem [resolvable:$true] %s594_s2 }
   0xb   :  { %s741_s3 = scalar_lea.vmem %s595_s2, 128  ;;  %p746_p1 = scmp.lt.s32.totalorder %s595_s2, %s595_s2 }
   0xc   :  { %650 = vmatmul.mubr.msk.f32.vlgmr.msra.gmra.mrb[0].mxu0 %vm37_vm0, %v814_v7  ;;  %686 = vmatprep.subr.bf16.mxu1 %v685_v16  ;;  %p742_p0 = scmp.ne.s32.totalorder %s595_s2, %s741_s3  ;;  %p747_p2 = scmp.lt.s32.totalorder %s741_s3, %s741_s3 }
   0xd   :  { %652 = vmatprep.mubr.msk.f32.mxu0 %vm37_vm0, %v819_v8  ;;  %688 = vmatpush3.bf16.msra.mxu1 %v685_v16 }
   0xe   :  { %p748_p3 = por %p747_p2, %p746_p1 }
  0x10   :  { %653 = vmatmul.mubr.msk.f32.gmra.mrb[2].mxu0 %vm37_vm0, %v828_v9  ;;  %p749_p4 = pnand %p748_p3, %p742_p0 }
  0x11   :  { %655 = vmatprep.mubr.msk.f32.mxu0 %vm37_vm0, %v833_v10 }
  0x14   :  { %656 = vmatmul.mubr.msk.f32.gmra.mrb[4].mxu0 %vm37_vm0, %v842_v11 }
  0x15   :  { %658 = vmatprep.mubr.msk.f32.mxu0 %vm37_vm0, %v847_v12 }
  0x18   :  { %659 = vmatmul.mubr.msk.f32.gmra.mrb[6].mxu0 %vm37_vm0, %v856_v13 }
  0xdf   :  { %v651_v18 = vpop.f32.mrb[0].mxu0 }
  0xe0   :  { %v134_v19 = vadd.f32 %v651_v18, %v602_v17  ;;  %v128_v20 = vpop.f32.mrb[1].mxu0 }
  0xe1   :  { %v129_v21 = vadd.f32 %v602_v17, %v128_v20 }
  0xe3   :  { %693 = vtanh.f32 %v129_v21  ;;  %v654_v22 = vpop.f32.mrb[2].mxu0 }
  0xe4   :  { %695 = vtanh.f32 %v134_v19  ;;  %v144_v23 = vadd.f32 %v654_v22, %v602_v17  ;;  %v138_v24 = vpop.f32.mrb[3].mxu0 }
  0xe5   :  { %v139_v25 = vadd.f32 %v602_v17, %v138_v24 }
  0xe7   :  { %697 = vtanh.f32 %v139_v25  ;;  %v657_v26 = vpop.f32.mrb[4].mxu0 }
  0xe8   :  { %699 = vtanh.f32 %v144_v23  ;;  %v154_v27 = vadd.f32 %v657_v26, %v602_v17  ;;  %v148_v28 = vpop.f32.mrb[5].mxu0 }
  0xe9   :  { %v149_v29 = vadd.f32 %v602_v17, %v148_v28 }
  0xea   :  { %701 = vtanh.f32 %v154_v27 }
  0xeb   :  { %703 = vtanh.f32 %v149_v29  ;;  %v660_v30 = vpop.f32.mrb[6].mxu0 }
  0xec   :  { %v164_v31 = vadd.f32 %v660_v30, %v602_v17  ;;  %v158_v32 = vpop.f32.mrb[7].mxu0 }
  0xed   :  { %v694_v33 = vpop.eup %693  ;;  %v159_v34 = vadd.f32 %v602_v17, %v158_v32 }
  0xee   :  { %v696_v35 = vpop.eup %695  ;;  %705 = vtanh.f32 %v164_v31  ;;  %665 = vmatprep.mubr.msk.f32.mxu1 %vm177_vm1, %v694_v33 }
  0xef   :  { %707 = vtanh.f32 %v159_v34  ;;  %666 = vmatmul.mubr.msk.f32.vlgmr.msra.gmra.mrb[0].mxu1 %vm177_vm1, %v696_v35 }
  0xf1   :  { %v698_v36 = vpop.eup %697 }
  0xf2   :  { %v700_v37 = vpop.eup %699  ;;  %668 = vmatprep.mubr.msk.f32.mxu1 %vm177_vm1, %v698_v36 }
  0xf3   :  { %669 = vmatmul.mubr.msk.f32.gmra.mrb[2].mxu1 %vm177_vm1, %v700_v37 }
  0xf4   :  { %v702_v38 = vpop.eup %701 }
  0xf5   :  { %v704_v39 = vpop.eup %703 }
  0xf6   :  { %671 = vmatprep.mubr.msk.f32.mxu1 %vm177_vm1, %v704_v39 }
  0xf7   :  { %672 = vmatmul.mubr.msk.f32.gmra.mrb[4].mxu1 %vm177_vm1, %v702_v38 }
  0xf8   :  { %v706_v40 = vpop.eup %705 }
  0xf9   :  { %v708_v41 = vpop.eup %707 }
  0xfa   :  { %674 = vmatprep.mubr.msk.f32.mxu1 %vm177_vm1, %v708_v41 }
  0xfb   :  { %675 = vmatmul.mubr.msk.f32.gmra.mrb[6].mxu1 %vm177_vm1, %v706_v40 }
 0x1c2   :  { %v667_v43 = vpop.f32.mrb[0].mxu1 }
 0x1c3   :  { %v315_v44 = vsel %vm307_vm2, %v667_v43, -inf  ;;  %v268_v45 = vpop.f32.mrb[1].mxu1 }
 0x1c4   :  { %v316_v46 = vrot.slane %v315_v44, 4  ;;  %v308_v47 = vsel %vm307_vm2, %v268_v45, -inf }
 0x1c5   :  { %v309_v48 = vrot.slane %v308_v47, 4 }
 0x1c6   :  { %v317_v49 = vmax.f32 %v315_v44, %v316_v46  ;;  %v670_v50 = vpop.f32.mrb[2].mxu1 }
 0x1c7   :  { %v310_v51 = vmax.f32 %v308_v47, %v309_v48  ;;  %v329_v52 = vsel %vm307_vm2, %v670_v50, -inf  ;;  %v278_v53 = vpop.f32.mrb[3].mxu1 }
 0x1c8   :  { %v318_v54 = vrot.slane %v317_v49, 2  ;;  %v330_v55 = vrot.slane %v329_v52, 4  ;;  %v322_v56 = vsel %vm307_vm2, %v278_v53, -inf }
 0x1c9   :  { %v311_v57 = vrot.slane %v310_v51, 2  ;;  %v323_v58 = vrot.slane %v322_v56, 4 }
 0x1ca   :  { %v319_v59 = vmax.f32 %v317_v49, %v318_v54  ;;  %v331_v60 = vmax.f32 %v329_v52, %v330_v55  ;;  %v673_v61 = vpop.f32.mrb[4].mxu1 }
 0x1cb   :  { %v312_v62 = vmax.f32 %v310_v51, %v311_v57  ;;  %v324_v63 = vmax.f32 %v322_v56, %v323_v58  ;;  %v343_v0 = vsel %vm307_vm2, %v673_v61, -inf  ;;  %v288_v1 = vpop.f32.mrb[5].mxu1 }
 0x1cc   :  { %v320_v2 = vrot.slane %v319_v59, 1  ;;  %v332_v3 = vrot.slane %v331_v60, 2  ;;  %v344_v4 = vrot.slane %v343_v0, 4  ;;  %v336_v6 = vsel %vm307_vm2, %v288_v1, -inf }
 0x1cd   :  { %v313_v14 = vrot.slane %v312_v62, 1  ;;  %v325_v15 = vrot.slane %v324_v63, 2  ;;  %v337_v16 = vrot.slane %v336_v6, 4 }
 0x1ce   :  { %v321_v17 = vmax.f32 %v319_v59, %v320_v2  ;;  %v333_v18 = vmax.f32 %v331_v60, %v332_v3  ;;  %v345_v19 = vmax.f32 %v343_v0, %v344_v4  ;;  %v676_v20 = vpop.f32.mrb[6].mxu1 }
 0x1cf   :  { %v314_v21 = vmax.f32 %v312_v62, %v313_v14  ;;  %v326_v22 = vmax.f32 %v324_v63, %v325_v15  ;;  %v338_v23 = vmax.f32 %v336_v6, %v337_v16  ;;  %v357_v24 = vsel %vm307_vm2, %v676_v20, -inf  ;;  %v298_v25 = vpop.f32.mrb[7].mxu1 }
 0x1d0   :  { %v365_v26 = vsub.f32 %v667_v43, %v321_v17  ;;  %v334_v27 = vrot.slane %v333_v18, 1  ;;  %v346_v28 = vrot.slane %v345_v19, 2  ;;  %v358_v29 = vrot.slane %v357_v24, 4 }
 0x1d1   :  { %v364_v30 = vsub.f32 %v268_v45, %v314_v21  ;;  %v327_v31 = vrot.slane %v326_v22, 1  ;;  %v339_v32 = vrot.slane %v338_v23, 2  ;;  %v350_v33 = vsel %vm307_vm2, %v298_v25, -inf }
 0x1d2   :  { %v374_v34 = vmul.f32 1.442695, %v365_v26  ;;  %v335_v35 = vmax.f32 %v333_v18, %v334_v27  ;;  %v347_v36 = vmax.f32 %v345_v19, %v346_v28  ;;  %v359_v37 = vmax.f32 %v357_v24, %v358_v29 }
 0x1d3   :  { %v372_v38 = vmul.f32 1.442695, %v364_v30  ;;  %v328_v39 = vmax.f32 %v326_v22, %v327_v31  ;;  %v340_v40 = vmax.f32 %v338_v23, %v339_v32  ;;  %v351_v41 = vrot.slane %v350_v33, 4 }
 0x1d4   :  { %709 = vpow2.f32 %v374_v34  ;;  %v367_v42 = vsub.f32 %v670_v50, %v335_v35  ;;  %v348_v44 = vrot.slane %v347_v36, 1  ;;  %v360_v43 = vrot.slane %v359_v37, 2 }
 0x1d5   :  { %711 = vpow2.f32 %v372_v38  ;;  %v366_v46 = vsub.f32 %v278_v53, %v328_v39  ;;  %v341_v47 = vrot.slane %v340_v40, 1  ;;  %v352_v45 = vmax.f32 %v350_v33, %v351_v41 }
 0x1d6   :  { %v378_v48 = vmul.f32 1.442695, %v367_v42  ;;  %v349_v49 = vmax.f32 %v347_v36, %v348_v44  ;;  %v361_v51 = vmax.f32 %v359_v37, %v360_v43 }
 0x1d7   :  { %v376_v52 = vmul.f32 1.442695, %v366_v46  ;;  %v342_v54 = vmax.f32 %v340_v40, %v341_v47  ;;  %v353_v55 = vrot.slane %v352_v45, 2 }
 0x1d8   :  { %713 = vpow2.f32 %v378_v48  ;;  %v369_v56 = vsub.f32 %v673_v61, %v349_v49  ;;  %v362_v57 = vrot.slane %v361_v51, 1 }
 0x1d9   :  { %715 = vpow2.f32 %v376_v52  ;;  %v368_v58 = vsub.f32 %v288_v1, %v342_v54  ;;  %v354_v59 = vmax.f32 %v352_v45, %v353_v55 }
 0x1da   :  { %v382_v60 = vmul.f32 1.442695, %v369_v56  ;;  %v363_v50 = vmax.f32 %v361_v51, %v362_v57 }
 0x1db   :  { %v380_v62 = vmul.f32 1.442695, %v368_v58  ;;  %v355_v63 = vrot.slane %v354_v59, 1 }
 0x1dc   :  { %717 = vpow2.f32 %v382_v60  ;;  %v371_v53 = vsub.f32 %v676_v20, %v363_v50 }
 0x1dd   :  { %719 = vpow2.f32 %v380_v62  ;;  %v356_v0 = vmax.f32 %v354_v59, %v355_v63 }
 0x1de   :  { %v885_v2 = vpop.eup %709  ;;  %v386_v3 = vmul.f32 1.442695, %v371_v53 }
 0x1df   :  { %v887_v4 = vpop.eup %711  ;;  %v395_v61 = vsel %vm307_vm2, %v885_v2, 0.0  ;;  %v370_v6 = vsub.f32 %v298_v25, %v356_v0 }
 0x1e0   :  { %v396_v14 = vrot.slane %v395_v61, 4  ;;  %v388_v1 = vsel %vm307_vm2, %v887_v4, 0.0  ;;  %721 = vpow2.f32 %v386_v3 }
 0x1e1   :  { %v389_v15 = vrot.slane %v388_v1, 4  ;;  %v384_v16 = vmul.f32 1.442695, %v370_v6 }
 0x1e2   :  { %v893_v17 = vpop.eup %713  ;;  %v397_v18 = vadd.f32 %v396_v14, %v395_v61 }
 0x1e3   :  { %v895_v19 = vpop.eup %715  ;;  %v390_v20 = vadd.f32 %v389_v15, %v388_v1  ;;  %v409_v21 = vsel %vm307_vm2, %v893_v17, 0.0  ;;  %723 = vpow2.f32 %v384_v16 }
 0x1e4   :  { %v398_v22 = vrot.slane %v397_v18, 2  ;;  %v410_v23 = vrot.slane %v409_v21, 4  ;;  %v402_v24 = vsel %vm307_vm2, %v895_v19, 0.0 }
 0x1e5   :  { %v391_v25 = vrot.slane %v390_v20, 2  ;;  %v403_v26 = vrot.slane %v402_v24, 4 }
 0x1e6   :  { %v901_v27 = vpop.eup %717  ;;  %v411_v28 = vadd.f32 %v410_v23, %v409_v21  ;;  %v399_v29 = vadd.f32 %v398_v22, %v397_v18 }
 0x1e7   :  { %v903_v30 = vpop.eup %719  ;;  %v392_v31 = vadd.f32 %v391_v25, %v390_v20  ;;  %v404_v32 = vadd.f32 %v403_v26, %v402_v24  ;;  %v423_v33 = vsel %vm307_vm2, %v901_v27, 0.0 }
 0x1e8   :  { %v412_v34 = vrot.slane %v411_v28, 2  ;;  %v424_v35 = vrot.slane %v423_v33, 4  ;;  %v416_v36 = vsel %vm307_vm2, %v903_v30, 0.0  ;;  %v400_v37 = vrot.slane %v399_v29, 1 }
 0x1e9   :  { %v405_v38 = vrot.slane %v404_v32, 2  ;;  %v417_v39 = vrot.slane %v416_v36, 4  ;;  %v393_v40 = vrot.slane %v392_v31, 1 }
 0x1ea   :  { %v909_v41 = vpop.eup %721  ;;  %v425_v42 = vadd.f32 %v424_v35, %v423_v33  ;;  %v401_v44 = vadd.f32 %v400_v37, %v399_v29  ;;  %v413_v43 = vadd.f32 %v412_v34, %v411_v28 }
 0x1eb   :  { %v406_v46 = vadd.f32 %v405_v38, %v404_v32  ;;  %v418_v47 = vadd.f32 %v417_v39, %v416_v36  ;;  %v437_v45 = vsel %vm307_vm2, %v909_v41, 0.0  ;;  %v394_v48 = vadd.f32 %v393_v40, %v392_v31 }
 0x1ec   :  { %v426_v49 = vrot.slane %v425_v42, 2  ;;  %v438_v51 = vrot.slane %v437_v45, 4  ;;  %725 = vrcp.f32 %v401_v44  ;;  %v414_v52 = vrot.slane %v413_v43, 1 }
 0x1ed   :  { %v724_v54 = vpop.eup %723  ;;  %v419_v55 = vrot.slane %v418_v47, 2  ;;  %727 = vrcp.f32 %v394_v48  ;;  %v407_v56 = vrot.slane %v406_v46, 1 }
 0x1ee   :  { %v427_v57 = vadd.f32 %v426_v49, %v425_v42  ;;  %v439_v58 = vadd.f32 %v438_v51, %v437_v45  ;;  %v430_v59 = vsel %vm307_vm2, %v724_v54, 0.0  ;;  %v415_v60 = vadd.f32 %v414_v52, %v413_v43 }
 0x1ef   :  { %v420_v50 = vadd.f32 %v419_v55, %v418_v47  ;;  %v431_v62 = vrot.slane %v430_v59, 4  ;;  %v408_v63 = vadd.f32 %v407_v56, %v406_v46 }
 0x1f0   :  { %v440_v53 = vrot.slane %v439_v58, 2  ;;  %729 = vrcp.f32 %v415_v60  ;;  %v428_v0 = vrot.slane %v427_v57, 1 }
 0x1f1   :  { %v432_v3 = vadd.f32 %v431_v62, %v430_v59  ;;  %v421_v61 = vrot.slane %v420_v50, 1  ;;  %731 = vrcp.f32 %v408_v63 }
 0x1f2   :  { %v441_v6 = vadd.f32 %v440_v53, %v439_v58  ;;  %v429_v14 = vadd.f32 %v428_v0, %v427_v57 }
 0x1f3   :  { %v433_v1 = vrot.slane %v432_v3, 2  ;;  %v422_v15 = vadd.f32 %v421_v61, %v420_v50 }
 0x1f4   :  { %v442_v16 = vrot.slane %v441_v6, 1 }
 0x1f5   :  { %v434_v18 = vadd.f32 %v433_v1, %v432_v3  ;;  %733 = vrcp.f32 %v422_v15 }
 0x1f6   :  { %v726_v20 = vpop.eup %725  ;;  %735 = vrcp.f32 %v429_v14  ;;  %v443_v21 = vadd.f32 %v442_v16, %v441_v6 }
 0x1f7   :  { %v728_v22 = vpop.eup %727  ;;  %v453_v23 = vmul.f32 %v726_v20, %v885_v2  ;;  %v435_v24 = vrot.slane %v434_v18, 1 }
 0x1f8   :  { %737 = vrcp.f32 %v443_v21  ;;  %v452_v28 = vmul.f32 %v728_v22, %v887_v4 }
 0x1f9   :  { %467 = vperm.xlu0 %691, %v453_v23   ;;  %v436_v25 = vadd.f32 %v435_v24, %v434_v18 }
 0x1fa   :  { %v730_v26 = vpop.eup %729 }
 0x1fb   :  { %v455_v29 = vmul.f32 %v730_v26, %v893_v17  ;;  %739 = vrcp.f32 %v436_v25  ;;  %v732_v31 = vpop.eup %731 }
 0x1fc   :  { %v454_v33 = vmul.f32 %v732_v31, %v895_v19 }
 0x1fd   :  { %462 = vperm.xlu0 %691, %v452_v28   ;;  %477 = vperm.xlu1 %692, %v455_v29  }
 0x1ff   :  { %v734_v32 = vpop.eup %733 }
 0x200   :  { %v736_v34 = vpop.eup %735  ;;  %v456_v35 = vmul.f32 %v734_v32, %v903_v30 }
 0x201   :  { %472 = vperm.xlu1 %692, %v454_v33   ;;  %v457_v2 = vmul.f32 %v736_v34, %v901_v27 }
 0x202   :  { %482 = vperm.xlu0 %691, %v456_v35   ;;  %v738_v36 = vpop.eup %737 }
 0x203   :  { %v459_v17 = vmul.f32 %v738_v36, %v909_v41 }
 0x205   :  { %v740_v37 = vpop.eup %739  ;;  %487 = vperm.xlu1 %692, %v457_v2  }
 0x206   :  { %v458_v4 = vmul.f32 %v740_v37, %v724_v54 }
 0x208   :  { %492 = vperm.xlu0 %691, %v458_v4  }
 0x209   :  { %497 = vperm.xlu1 %692, %v459_v17  }
 0x278   :  { %v468_v38 = vpop.permute.xlu0 %467 }
 0x279   :  { %v501_v39 = vmul.f32 %v468_v38, %v814_v7 }
 0x27b   :  { %v515_v19 = vsel %vm37_vm0, %v501_v39, 0.0 }
 0x27c   :  { %v516_v40 = vrot.slane %v515_v19, 4  ;;  %v463_v42 = vpop.permute.xlu0 %462  ;;  %v478_v30 = vpop.permute.xlu1 %477 }
 0x27d   :  { %v500_v44 = vmul.f32 %v463_v42, %v807_v5  ;;  %v503_v27 = vmul.f32 %v478_v30, %v828_v9 }
 0x27e   :  { %v517_v43 = vadd.f32 %v516_v40, %v515_v19 }
 0x27f   :  { %v508_v46 = vsel %vm37_vm0, %v500_v44, 0.0  ;;  %v529_v47 = vsel %vm37_vm0, %v503_v27, 0.0 }
 0x280   :  { %v509_v41 = vrot.slane %v508_v46, 4  ;;  %v530_v45 = vrot.slane %v529_v47, 4  ;;  %v473_v48 = vpop.permute.xlu1 %472  ;;  %v518_v49 = vrot.slane %v517_v43, 2 }
 0x281   :  { %v502_v7 = vmul.f32 %v473_v48, %v819_v8  ;;  %v483_v51 = vpop.permute.xlu0 %482 }
 0x282   :  { %v510_v52 = vadd.f32 %v509_v41, %v508_v46  ;;  %v531_v54 = vadd.f32 %v530_v45, %v529_v47  ;;  %v504_v55 = vmul.f32 %v483_v51, %v833_v10  ;;  %v519_v59 = vadd.f32 %v518_v49, %v517_v43 }
 0x283   :  { %v522_v5 = vsel %vm37_vm0, %v502_v7, 0.0 }
 0x284   :  { %v511_v56 = vrot.slane %v510_v52, 2  ;;  %v532_v9 = vrot.slane %v531_v54, 2  ;;  %v523_v57 = vrot.slane %v522_v5, 4  ;;  %v488_v58 = vpop.permute.xlu1 %487  ;;  %v536_v60 = vsel %vm37_vm0, %v504_v55, 0.0 }
 0x285   :  { %v505_v50 = vmul.f32 %v488_v58, %v842_v11  ;;  %v537_v8 = vrot.slane %v536_v60, 4  ;;  %v520_v1 = vrot.slane %v519_v59, 1 }
 0x286   :  { %v512_v62 = vadd.f32 %v511_v56, %v510_v52  ;;  %v533_v63 = vadd.f32 %v532_v9, %v531_v54  ;;  %v524_v53 = vadd.f32 %v523_v57, %v522_v5 }
 0x287   :  { %v543_v0 = vsel %vm37_vm0, %v505_v50, 0.0  ;;  %v493_v3 = vpop.permute.xlu0 %492  ;;  %v538_v15 = vadd.f32 %v537_v8, %v536_v60  ;;  %v521_v31 = vadd.f32 %v520_v1, %v519_v59 }
 0x288   :  { %v513_v61 = vrot.slane %v512_v62, 1  ;;  %v525_v10 = vrot.slane %v524_v53, 2  ;;  %v544_v6 = vrot.slane %v543_v0, 4  ;;  %v498_v14 = vpop.permute.xlu1 %497  ;;  %v506_v16 = vmul.f32 %v493_v3, %v847_v12 }
 0x289   :  { %v507_v18 = vmul.f32 %v498_v14, %v856_v13  ;;  %v534_v20 = vrot.slane %v533_v63, 1  ;;  %v539_v23 = vrot.slane %v538_v15, 2 }
 0x28a   :  { %v526_v21 = vadd.f32 %v525_v10, %v524_v53  ;;  %v545_v11 = vadd.f32 %v544_v6, %v543_v0  ;;  %v514_v22 = vadd.f32 %v513_v61, %v512_v62  ;;  %v550_v24 = vsel %vm37_vm0, %v506_v16, 0.0 }
 0x28b   :  { %v557_v25 = vsel %vm37_vm0, %v507_v18, 0.0  ;;  %v551_v29 = vrot.slane %v550_v24, 4  ;;  %v540_v32 = vadd.f32 %v539_v23, %v538_v15  ;;  %v535_v2 = vadd.f32 %v534_v20, %v533_v63 }
 0x28c   :  { %v527_v26 = vrot.slane %v526_v21, 1  ;;  %v546_v28 = vrot.slane %v545_v11, 2  ;;  %v558_v33 = vrot.slane %v557_v25, 4  ;;  %v573_v35 = vsel %vm572_vm3, %v521_v31, %v514_v22 }
 0x28d   :  { %v552_v13 = vadd.f32 %v551_v29, %v550_v24  ;;  %v541_v36 = vrot.slane %v540_v32, 1 }
 0x28e   :  { %v528_v12 = vadd.f32 %v527_v26, %v526_v21  ;;  %v547_v34 = vadd.f32 %v546_v28, %v545_v11  ;;  %v559_v37 = vadd.f32 %v558_v33, %v557_v25 }
 0x28f   :  { %v553_v38 = vrot.slane %v552_v13, 2  ;;  %v542_v39 = vadd.f32 %v541_v36, %v540_v32 }
 0x290   :  { %v575_v4 = vsel %vm574_vm4, %v528_v12, %v573_v35  ;;  %v548_v17 = vrot.slane %v547_v34, 1  ;;  %v560_v19 = vrot.slane %v559_v37, 2 }
 0x291   :  { %v577_v40 = vsel %vm576_vm5, %v535_v2, %v575_v4  ;;  %v554_v30 = vadd.f32 %v553_v38, %v552_v13 }
 0x292   :  { %v549_v42 = vadd.f32 %v548_v17, %v547_v34  ;;  %v561_v44 = vadd.f32 %v560_v19, %v559_v37  ;;  %v579_v27 = vsel %vm578_vm6, %v542_v39, %v577_v40 }
 0x293   :  { %v555_v43 = vrot.slane %v554_v30, 1 }
 0x294   :  { %v562_v46 = vrot.slane %v561_v44, 1  ;;  %v581_v47 = vsel %vm580_vm7, %v549_v42, %v579_v27 }
 0x295   :  { %v556_v41 = vadd.f32 %v555_v43, %v554_v30 }
 0x296   :  { %v563_v45 = vadd.f32 %v562_v46, %v561_v44 }
 0x297   :  { %v583_v48 = vsel %vm582_vm8, %v556_v41, %v581_v47 }
 0x298   :  { %v585_v49 = vsel %vm584_vm9, %v563_v45, %v583_v48 }
 0x299   :  { %587 = vst.msk [vmem:[#allocation2] sm:$0xff] %vm37_vm0, %v585_v49 }
 0x29a   :  { %752 = shalt.err (!%p749_p4)
}
 0x29b   :  { %s753_s20 = scalar_lea.hbm %s954_s4, 128 }
 0x29c   :  { %p754_p5 = scmp.ne.s32.totalorder %s954_s4, %s753_s20  ;;  %p757_p6 = scmp.lt.u32.totalorder %s753_s20, %s954_s4 }
 0x29e   :  { %p759_p7 = pnand %p757_p6, %p754_p5 }
 0x2a0   :  { %762 = shalt.err (!%p759_p7)
}
 0x2a1   :  { %597 = dma.vmem_to_hbm [thread:$0]  %s595_s2, 128, %s954_s4, [#allocation3]  }
 0x2a2   :  { %763 = dma.done.wait [#allocation3], 128  }
 0x2a3   :  { %764 = vsyncadd [#allocation3], 4294967168 }
 0x2a4   :  { %601 = vsyncpa [#allocation3], 1 }

</bundles_post_ra>
